<compile_context>
chip_gen: v6e
topology: v6e:2x2x1
jax: 0.10.0
libtpu: 0.0.40
codegen_flags: <defaults>
</compile_context>

<pallas_src>
import functools

import jax
import jax.numpy as jnp
from jax.experimental import pallas as pl
from jax.experimental.pallas import tpu as pltpu

RAY_DIM = 6       # light-field ray parameterization (two-plane / Pluecker)
HIDDEN = 32       # MLP hidden width
OUT_DIM = 3       # rgb
TN_DEFAULT = 8192 # rays (lanes) per grid step; sweep 4096-32768 per chip

_WB12_COLS = RAY_DIM + HIDDEN + 2   # [W1^T | W2^T | b1 | b2]  -> (HIDDEN, 40)
_WB3_COLS = HIDDEN + 1              # [W3^T | b3]              -> (OUT_DIM, 33)


def _round_up(x, m):
    return ((x + m - 1) // m) * m


def _lightfield_mlp_kernel(x_ref, wb12_ref, wb3_ref, rgb_ref):
    """Feature-major per-ray MLP: rgb = sigmoid(W3t@relu(W2t@relu(W1t@x+b1)+b2)+b3)."""
    x = x_ref[...].astype(jnp.float32)                            # (RAY_DIM, TN)

    p12 = wb12_ref[...]                                           # (HIDDEN, 40) f32
    w1t = p12[:, :RAY_DIM]                                        # (HIDDEN, RAY_DIM)
    w2t = p12[:, RAY_DIM:RAY_DIM + HIDDEN]                        # (HIDDEN, HIDDEN)
    b1 = p12[:, RAY_DIM + HIDDEN:RAY_DIM + HIDDEN + 1]            # (HIDDEN, 1)
    b2 = p12[:, RAY_DIM + HIDDEN + 1:RAY_DIM + HIDDEN + 2]        # (HIDDEN, 1)

    p3 = wb3_ref[...]                                             # (OUT_DIM, 33) f32
    w3t = p3[:, :HIDDEN]                                          # (OUT_DIM, HIDDEN)
    b3 = p3[:, HIDDEN:HIDDEN + 1]                                 # (OUT_DIM, 1)

    h = jnp.dot(w1t, x, preferred_element_type=jnp.float32) + b1  # (HIDDEN, TN)
    h = jnp.maximum(h, 0.0)
    h = jnp.dot(w2t, h, preferred_element_type=jnp.float32) + b2  # (HIDDEN, TN)
    h = jnp.maximum(h, 0.0)
    o = jnp.dot(w3t, h, preferred_element_type=jnp.float32) + b3  # (OUT_DIM, TN)
    rgb_ref[...] = jax.nn.sigmoid(o).astype(rgb_ref.dtype)        # bf16 store, lane-dense


def _pack_params(params):
    """Pack the 6 tiny parameter tensors into two pre-transposed f32 slabs."""
    w1, b1, w2, b2, w3, b3 = params
    wb12 = jnp.concatenate(
        [w1.T, w2.T, b1.reshape(HIDDEN, 1), b2.reshape(HIDDEN, 1)],
        axis=1).astype(jnp.float32)                               # (HIDDEN, 40)
    wb3 = jnp.concatenate(
        [w3.T, b3.reshape(OUT_DIM, 1)], axis=1).astype(jnp.float32)  # (OUT_DIM, 33)
    return wb12, wb3


@functools.partial(jax.jit, static_argnames=("tn",))
def render_lightfield_forward(rays, params, *, tn=TN_DEFAULT):
    """JAX equivalent of RenderLightfield.forward == Render._run_multiple.

    rays: any shape (..., RAY_DIM). Returns dict of (-1, out_dim) f32 arrays.
    """
    x = rays.reshape(-1, rays.shape[-1])                  # x.view(-1, x.shape[-1])
    n = x.shape[0]

    # Lane-dense feature-major layout + bf16 at the HBM boundary (layout plumbing).
    x_t = x.astype(jnp.bfloat16).T                        # (RAY_DIM, N) bf16
    wb12, wb3 = _pack_params(params)

    # Clamp the tile for tiny ray batches; keep it a multiple of 128 lanes.
    tn_eff = min(tn, max(128, _round_up(n, 128)))
    grid = (pl.cdiv(n, tn_eff),)                          # partial last block masked by Pallas
    const = lambda i: (0, 0)                              # params broadcast to every tile

    rgb_t = pl.pallas_call(
        _lightfield_mlp_kernel,
        out_shape=jax.ShapeDtypeStruct((OUT_DIM, n), jnp.bfloat16),
        grid_spec=pltpu.PrefetchScalarGridSpec(
            num_scalar_prefetch=0,
            grid=grid,
            in_specs=[
                pl.BlockSpec((RAY_DIM, tn_eff), lambda i: (0, i)),  # rays (lane-dense)
                pl.BlockSpec((HIDDEN, _WB12_COLS), const),          # [W1^T|W2^T|b1|b2]
                pl.BlockSpec((OUT_DIM, _WB3_COLS), const),          # [W3^T|b3]
            ],
            out_specs=pl.BlockSpec((OUT_DIM, tn_eff), lambda i: (0, i)),
        ),
        compiler_params=pltpu.CompilerParams(
            dimension_semantics=("parallel",)),
        # If DMA is still exposed at large TN, add pipeline_mode=pl.Buffered(3)
        # on the rays BlockSpec (watch the v7x 64 MiB VMEM budget).
    )(x_t, wb12, wb3)

    rgb = rgb_t.T.astype(jnp.float32)                     # back to (N, OUT_DIM) f32
    out = {"rgb": rgb}
    # TODO(synk): the real nlf model may emit extra dict keys (e.g. embeddings);
    # only 'rgb' is produced by this synthetic light-field MLP.
    for key in out:
        out[key] = out[key].reshape(-1, out[key].shape[-1])
    return out


def init_params(key):
    """Deterministic synthetic parameters for the light-field MLP."""
    k1, k2, k3 = jax.random.split(key, 3)
    w1 = jax.random.normal(k1, (RAY_DIM, HIDDEN), jnp.float32) * 0.3
    b1 = jnp.zeros((1, HIDDEN), jnp.float32)
    w2 = jax.random.normal(k2, (HIDDEN, HIDDEN), jnp.float32) * 0.2
    b2 = jnp.zeros((1, HIDDEN), jnp.float32)
    w3 = jax.random.normal(k3, (HIDDEN, OUT_DIM), jnp.float32) * 0.2
    b3 = jnp.zeros((1, OUT_DIM), jnp.float32)
    return (w1, b1, w2, b2, w3, b3)


def _reference_forward(rays, params):
    """Pure-JAX reference (same bf16 input rounding as the kernel boundary)."""
    w1, b1, w2, b2, w3, b3 = params
    x = rays.reshape(-1, rays.shape[-1]).astype(jnp.bfloat16).astype(jnp.float32)
    h = jnp.maximum(x @ w1 + b1, 0.0)
    h = jnp.maximum(h @ w2 + b2, 0.0)
    return jax.nn.sigmoid(h @ w3 + b3)


if __name__ == "__main__":
    key = jax.random.PRNGKey(0)
    k_rays, k_rays2, k_rays3, k_params = jax.random.split(key, 4)
    params = init_params(k_params)

    # 1) Small demo: batch=2, 16x16 rays, 6-D parameterization (512 rays).
    rays = jax.random.normal(k_rays, (2, 16, 16, RAY_DIM), jnp.float32)
    out = render_lightfield_forward(rays, params)
    rgb = jax.block_until_ready(out["rgb"])
    assert rgb.shape == (2 * 16 * 16, OUT_DIM), rgb.shape
    ref = _reference_forward(rays, params)
    assert jnp.allclose(rgb, ref, atol=2e-2, rtol=2e-2), "mismatch vs reference"

    # 2) Ragged N (231 rays, not a multiple of 128): exercises edge-block masking.
    rays_r = jax.random.normal(k_rays2, (3, 7, 11, RAY_DIM), jnp.float32)
    out_r = render_lightfield_forward(rays_r, params)
    rgb_r = jax.block_until_ready(out_r["rgb"])
    assert rgb_r.shape == (3 * 7 * 11, OUT_DIM), rgb_r.shape
    ref_r = _reference_forward(rays_r, params)
    assert jnp.allclose(rgb_r, ref_r, atol=2e-2, rtol=2e-2), "ragged mismatch"

    # 3) Multi-step grid (9216 rays -> 2 grid steps at TN=8192, partial 2nd tile).
    rays_g = jax.random.normal(k_rays3, (4, 48, 48, RAY_DIM), jnp.float32)
    out_g = render_lightfield_forward(rays_g, params)
    rgb_g = jax.block_until_ready(out_g["rgb"])
    assert rgb_g.shape == (4 * 48 * 48, OUT_DIM), rgb_g.shape
    ref_g = _reference_forward(rays_g, params)
    assert jnp.allclose(rgb_g, ref_g, atol=2e-2, rtol=2e-2), "multi-tile mismatch"

    print("KERNEL_OK")
</pallas_src>

<mosaic_0001>
module attributes {stable_mosaic.version = 11 : i64} {
  func.func @_lightfield_mlp_kernel(%arg0: i32, %arg1: memref<6x512xbf16, #tpu.memory_space<vmem>>, %arg2: memref<32x40xf32, #tpu.memory_space<vmem>>, %arg3: memref<3x33xf32, #tpu.memory_space<vmem>>, %arg4: memref<3x512xbf16, #tpu.memory_space<vmem>>) attributes {dimension_semantics = [#tpu.dimension_semantics<parallel>], iteration_bounds = array<i64: 1>, scalar_prefetch = 0 : i64, scratch_operands = 0 : i64, tpu.core_type = #tpu.core_type<tc>, window_params = [{transform_indices = @transform_0, window_bounds = array<i64: 6, 512>}, {pipeline_mode = #tpu.pipeline_mode<synchronous>, transform_indices = @transform_1, window_bounds = array<i64: 32, 40>}, {pipeline_mode = #tpu.pipeline_mode<synchronous>, transform_indices = @transform_2, window_bounds = array<i64: 3, 33>}, {transform_indices = @transform_3, window_bounds = array<i64: 3, 512>}]} {
    %c0 = arith.constant 0 : index
    %c0_0 = arith.constant 0 : index
    %0 = vector.load %arg1[%c0, %c0_0] : memref<6x512xbf16, #tpu.memory_space<vmem>>, vector<6x512xbf16>
    %1 = arith.extf %0 : vector<6x512xbf16> to vector<6x512xf32>
    %c0_1 = arith.constant 0 : index
    %c0_2 = arith.constant 0 : index
    %2 = vector.load %arg2[%c0_1, %c0_2] : memref<32x40xf32, #tpu.memory_space<vmem>>, vector<32x40xf32>
    %3 = vector.extract_strided_slice %2 {offsets = [0, 0], sizes = [32, 6], strides = [1, 1]} : vector<32x40xf32> to vector<32x6xf32>
    %4 = vector.extract_strided_slice %2 {offsets = [0, 6], sizes = [32, 32], strides = [1, 1]} : vector<32x40xf32> to vector<32x32xf32>
    %5 = vector.extract_strided_slice %2 {offsets = [0, 38], sizes = [32, 1], strides = [1, 1]} : vector<32x40xf32> to vector<32x1xf32>
    %6 = vector.extract_strided_slice %2 {offsets = [0, 39], sizes = [32, 1], strides = [1, 1]} : vector<32x40xf32> to vector<32x1xf32>
    %c0_3 = arith.constant 0 : index
    %c0_4 = arith.constant 0 : index
    %7 = vector.load %arg3[%c0_3, %c0_4] : memref<3x33xf32, #tpu.memory_space<vmem>>, vector<3x33xf32>
    %8 = vector.extract_strided_slice %7 {offsets = [0, 0], sizes = [3, 32], strides = [1, 1]} : vector<3x33xf32> to vector<3x32xf32>
    %9 = vector.extract_strided_slice %7 {offsets = [0, 32], sizes = [3, 1], strides = [1, 1]} : vector<3x33xf32> to vector<3x1xf32>
    %cst = arith.constant dense<0.000000e+00> : vector<32x512xf32>
    %10 = tpu.matmul %3, %1, %cst {dimension_numbers = #tpu.dot_dimension_numbers<[1], [0], [0], [1], [0, 0, 1, 1], [], []>} : vector<32x6xf32>, vector<6x512xf32>, vector<32x512xf32> -> vector<32x512xf32>
    %11 = vector.broadcast %5 : vector<32x1xf32> to vector<32x512xf32>
    %12 = arith.addf %10, %11 : vector<32x512xf32>
    %cst_5 = arith.constant 0.000000e+00 : f32
    %13 = vector.broadcast %cst_5 : f32 to vector<32x512xf32>
    %14 = arith.maximumf %12, %13 : vector<32x512xf32>
    %cst_6 = arith.constant dense<0.000000e+00> : vector<32x512xf32>
    %15 = tpu.matmul %4, %14, %cst_6 {dimension_numbers = #tpu.dot_dimension_numbers<[1], [0], [0], [1], [0, 0, 1, 1], [], []>} : vector<32x32xf32>, vector<32x512xf32>, vector<32x512xf32> -> vector<32x512xf32>
    %16 = vector.broadcast %6 : vector<32x1xf32> to vector<32x512xf32>
    %17 = arith.addf %15, %16 : vector<32x512xf32>
    %cst_7 = arith.constant 0.000000e+00 : f32
    %18 = vector.broadcast %cst_7 : f32 to vector<32x512xf32>
    %19 = arith.maximumf %17, %18 : vector<32x512xf32>
    %cst_8 = arith.constant dense<0.000000e+00> : vector<3x512xf32>
    %20 = tpu.matmul %8, %19, %cst_8 {dimension_numbers = #tpu.dot_dimension_numbers<[1], [0], [0], [1], [0, 0, 1, 1], [], []>} : vector<3x32xf32>, vector<32x512xf32>, vector<3x512xf32> -> vector<3x512xf32>
    %21 = vector.broadcast %9 : vector<3x1xf32> to vector<3x512xf32>
    %22 = arith.addf %20, %21 : vector<3x512xf32>
    %23 = arith.negf %22 : vector<3x512xf32>
    %24 = math.exp %23 : vector<3x512xf32>
    %cst_9 = arith.constant 1.000000e+00 : f32
    %25 = vector.broadcast %cst_9 : f32 to vector<3x512xf32>
    %26 = arith.addf %25, %24 : vector<3x512xf32>
    %27 = arith.divf %25, %26 : vector<3x512xf32>
    %28 = arith.truncf %27 : vector<3x512xf32> to vector<3x512xbf16>
    %c0_10 = arith.constant 0 : index
    %c0_11 = arith.constant 0 : index
    %29 = vector.load %arg4[%c0_10, %c0_11] : memref<3x512xbf16, #tpu.memory_space<vmem>>, vector<3x512xbf16>
    tpu.vector_store %arg4[%c0_10, %c0_11], %28 {strides = array<i32>} : memref<3x512xbf16, #tpu.memory_space<vmem>>, vector<3x512xbf16>,
    return
  }
  func.func @transform_0(%arg0: i32) -> (i32, i32) {
    %c0_i32 = arith.constant 0 : i32
    %c0_i32_0 = arith.constant 0 : i32
    return %c0_i32, %arg0 : i32, i32
  }
  func.func @transform_1(%arg0: i32) -> (i32, i32) {
    %c0_i32 = arith.constant 0 : i32
    %c0_i32_0 = arith.constant 0 : i32
    %c0_i32_1 = arith.constant 0 : i32
    return %c0_i32, %c0_i32_0 : i32, i32
  }
  func.func @transform_2(%arg0: i32) -> (i32, i32) {
    %c0_i32 = arith.constant 0 : i32
    %c0_i32_0 = arith.constant 0 : i32
    %c0_i32_1 = arith.constant 0 : i32
    return %c0_i32, %c0_i32_0 : i32, i32
  }
  func.func @transform_3(%arg0: i32) -> (i32, i32) {
    %c0_i32 = arith.constant 0 : i32
    %c0_i32_0 = arith.constant 0 : i32
    return %c0_i32, %arg0 : i32, i32
  }
}

</mosaic_0001>

<bundles_post_ra>
// kernel: render_lightfield_forward.1
= control target key start
LH: loop header
LB: loop body
LE: loop exit
PB: predicated region body
PF: predicated region fallthrough
CT: control target
= control target key end

     0   :  { %vm54_vm0 = vcmask 1045504   ;;  %v765_v2 = vmov 0.0   ;;  %v766_v9 = vmov 38   ;;  %vm45_vm1 = vcmask 48128   ;;  %s767_s23 = smov 122   ;;  %s875_s0 = inlined_call_operand.vmem [shape: bf16[6,512], index: 0, kind: input, shape index: {}]   ;;  %s876_s1 = inlined_call_operand.vmem [shape: f32[32,40], index: 1, kind: input, shape index: {}]   ;;  %s877_s2 = inlined_call_operand.vmem [shape: f32[3,33], index: 2, kind: input, shape index: {}]   ;;  %s878_s3 = inlined_call_operand.vmem [shape: bf16[3,512], index: 3, kind: output, shape index: {}]  }
   0x1   :  { %v14_v0 = vld [vmem:[%s875_s0] sm:$0x77]  ;;  %v15_v1 = vld [vmem:[%s875_s0 + $0x8] sm:$0x77]  ;;  %131 = vmatprep.mubr.f32.mxu0 %v765_v2  ;;  %220 = vmatprep.mubr.f32.mxu1 %v765_v2  ;;  %v23_v8 = vld [vmem:[%s876_s1 + $0x18] sm:$0xff]  ;;  %v768_v12 = vmov 39  }
   0x2   :  { %v16_v3 = vunpack.c.l.bf16 %v14_v0  ;;  %v17_v4 = vunpack.c.h.bf16 %v14_v0  ;;  %v18_v5 = vunpack.c.l.bf16 %v15_v1  ;;  %v19_v6 = vunpack.c.h.bf16 %v15_v1  ;;  %v21_v7 = vld [vmem:[%s876_s1 + $0x8] sm:$0xff]  ;;  %744 = vset.pattern.permute.xlu1 %v766_v9  ;;  %743 = vset.pattern.permute.xlu0 %v766_v9  ;;  %v20_v10 = vld [vmem:[%s876_s1] sm:$0xff]  ;;  %v22_v11 = vld [vmem:[%s876_s1 + $0x10] sm:$0xff] }
   0x3   :  { %32 = vperm.xlu1 %744, %v21_v7   ;;  %42 = vperm.xlu0 %743, %v23_v8   ;;  %vm285_vm2 = vcmask 261120   ;;  %vm687_vm3 = vcmask 1041408   ;;  %vm688_vm4 = vsmask.f32 1280  ;;  %vm690_vm5 = vcmask 1043458  }
   0x4   :  { %709 = vmatprep.subr.msk.mxu0 %vm54_vm0, %v17_v4  ;;  %715 = vmatprep.subr.msk.mxu1 %vm54_vm0, %v19_v6  ;;  %v850_v6 = vld [vmem:[%s877_s2] sm:$0x7]  ;;  %vm691_vm6 = vsmask.f32 3328  ;;  %vm857_vm7 = vmand %vm687_vm3, %vm688_vm4  ;;  %vm694_vm9 = vcmask 1045508   ;;  %vm698_vm13 = vcmask 1047558  }
   0x5   :  { %710 = vmatpush1.msk.msra.mxu0 %vm54_vm0, %v16_v3  ;;  %716 = vmatpush1.msk.msra.mxu1 %vm54_vm0, %v18_v5  ;;  %vm861_vm8 = vmand %vm690_vm5, %vm691_vm6  ;;  %vm695_vm10 = vsmask.f32 5376  ;;  %vm699_vm14 = vsmask.f32 7424 }
   0x6   :  { %711 = vmatmul.mubr.msk.f32.vlgmr.msra.gmra.mxu0 %vm45_vm1, %v20_v10  ;;  %717 = vmatmul.mubr.msk.f32.vlgmr.msra.gmra.mxu1 %vm45_vm1, %v20_v10  ;;  %vm693_vm11 = vmor %vm861_vm8, %vm857_vm7 }
   0x7   :  { %137 = vmatprep.mubr.f32.mxu0 %v765_v2  ;;  %226 = vmatprep.mubr.f32.mxu1 %v765_v2  ;;  %vm696_vm12 = vmand %vm694_vm9, %vm695_vm10 }
   0x8   :  { %27 = vperm.xlu1 %744, %v20_v10   ;;  %37 = vperm.xlu0 %743, %v22_v11   ;;  %vm697_vm15 = vmor %vm696_vm12, %vm693_vm11 }
   0x9   :  { %vm700_vm0 = vmand %vm698_vm13, %vm699_vm14 }
   0xa   :  { %712 = vmatmul.mubr.msk.f32.gmra.mxu0 %vm45_vm1, %v21_v7  ;;  %718 = vmatmul.mubr.msk.f32.gmra.mxu1 %vm45_vm1, %v21_v7 }
   0xb   :  { %143 = vmatprep.mubr.f32.mxu0 %v765_v2  ;;  %232 = vmatprep.mubr.f32.mxu1 %v765_v2 }
   0xc   :  { %277 = vrot.lane.b32.xlu0 %v20_v10, %s767_s23  ;;  %279 = vrot.lane.b32.xlu1 %v21_v7, %s767_s23 }
   0xd   :  { %745 = vset.pattern.permute.xlu0 %v768_v12  ;;  %746 = vset.pattern.permute.xlu1 %v768_v12 }
   0xe   :  { %713 = vmatmul.mubr.msk.f32.gmra.mxu0 %vm45_vm1, %v22_v11  ;;  %719 = vmatmul.mubr.msk.f32.gmra.mxu1 %vm45_vm1, %v22_v11 }
   0xf   :  { %149 = vmatprep.mubr.f32.mxu0 %v765_v2  ;;  %238 = vmatprep.mubr.f32.mxu1 %v765_v2 }
  0x10   :  { %281 = vrot.lane.b32.xlu0 %v22_v11, %s767_s23  ;;  %283 = vrot.lane.b32.xlu1 %v23_v8, %s767_s23 }
  0x12   :  { %714 = vmatmul.mubr.msk.f32.gmra.mxu0 %vm45_vm1, %v23_v8  ;;  %720 = vmatmul.mubr.msk.f32.gmra.mxu1 %vm45_vm1, %v23_v8  ;;  %vm701_vm1 = vmor %vm700_vm0, %vm697_vm15 }
  0x13   :  { %358 = vmatprep.mubr.f32.mxu0 %v765_v2  ;;  %447 = vmatprep.mubr.f32.mxu1 %v765_v2 }
  0x14   :  { %274 = vperm.xlu0 %745, %v23_v8   ;;  %270 = vperm.xlu1 %746, %v22_v11  }
  0x18   :  { %262 = vperm.xlu0 %745, %v20_v10   ;;  %266 = vperm.xlu1 %746, %v21_v7   ;;  %v769_v7 = vmov 32  }
  0x1c   :  { %747 = vset.pattern.permute.xlu1 %v769_v7  ;;  %748 = vset.pattern.permute.xlu0 %v769_v7 }
  0x1d   :  { %490 = vperm.xlu1 %747, %v850_v6  }
  0x7e   :  { %v43_v21 = vpop.permute.xlu0 %42  ;;  %v33_v26 = vpop.permute.xlu1 %32 }
  0x83   :  { %v38_v29 = vpop.permute.xlu0 %37  ;;  %v28_v40 = vpop.permute.xlu1 %27 }
  0x87   :  { %v278_v1 = vpop.permute.xlu0 %277  ;;  %v280_v3 = vpop.permute.xlu1 %279 }
  0x8b   :  { %v282_v4 = vpop.permute.xlu0 %281  ;;  %v284_v5 = vpop.permute.xlu1 %283 }
  0xc6   :  { %v133_v13 = vpop.f32.mrf.mxu0  ;;  %v222_v14 = vpop.f32.mrf.mxu1 }
  0xc7   :  { %v134_v53 = vadd.f32 %v133_v13, %v28_v40  ;;  %v223_v54 = vadd.f32 %v222_v14, %v28_v40 }
  0xc8   :  { %v135_v15 = vpop.f32.mrf.mxu0  ;;  %v224_v16 = vpop.f32.mrf.mxu1 }
  0xc9   :  { %v136_v49 = vadd.f32 %v135_v15, %v28_v40  ;;  %v225_v50 = vadd.f32 %v224_v16, %v28_v40  ;;  %v245_v63 = vmax.f32 %v134_v53, 0.0  ;;  %v247_v0 = vmax.f32 %v223_v54, 0.0 }
  0xca   :  { %v139_v17 = vpop.f32.mrf.mxu0  ;;  %v228_v18 = vpop.f32.mrf.mxu1 }
  0xcb   :  { %v140_v45 = vadd.f32 %v139_v17, %v33_v26  ;;  %v229_v46 = vadd.f32 %v228_v18, %v33_v26  ;;  %v246_v61 = vmax.f32 %v136_v49, 0.0  ;;  %v248_v62 = vmax.f32 %v225_v50, 0.0  ;;  %v271_v17 = vpop.permute.xlu1 %270 }
  0xcc   :  { %v141_v19 = vpop.f32.mrf.mxu0  ;;  %v230_v20 = vpop.f32.mrf.mxu1 }
  0xcd   :  { %v142_v41 = vadd.f32 %v141_v19, %v33_v26  ;;  %v231_v42 = vadd.f32 %v230_v20, %v33_v26  ;;  %v249_v59 = vmax.f32 %v140_v45, 0.0  ;;  %v251_v60 = vmax.f32 %v229_v46, 0.0  ;;  %v275_v20 = vpop.permute.xlu0 %274 }
  0xce   :  { %v145_v22 = vpop.f32.mrf.mxu0  ;;  %v234_v23 = vpop.f32.mrf.mxu1 }
  0xcf   :  { %v146_v38 = vadd.f32 %v145_v22, %v38_v29  ;;  %v235_v39 = vadd.f32 %v234_v23, %v38_v29  ;;  %v250_v57 = vmax.f32 %v142_v41, 0.0  ;;  %v252_v58 = vmax.f32 %v231_v42, 0.0 }
  0xd0   :  { %v147_v24 = vpop.f32.mrf.mxu0  ;;  %v236_v25 = vpop.f32.mrf.mxu1 }
  0xd1   :  { %v148_v34 = vadd.f32 %v147_v24, %v38_v29  ;;  %v237_v35 = vadd.f32 %v236_v25, %v38_v29  ;;  %v253_v55 = vmax.f32 %v146_v38, 0.0  ;;  %v255_v56 = vmax.f32 %v235_v39, 0.0 }
  0xd2   :  { %v151_v27 = vpop.f32.mrf.mxu0  ;;  %v240_v28 = vpop.f32.mrf.mxu1 }
  0xd3   :  { %v152_v30 = vadd.f32 %v151_v27, %v43_v21  ;;  %v241_v31 = vadd.f32 %v240_v28, %v43_v21  ;;  %v254_v51 = vmax.f32 %v148_v34, 0.0  ;;  %v256_v52 = vmax.f32 %v237_v35, 0.0  ;;  %v267_v27 = vpop.permute.xlu1 %266  ;;  %v263_v34 = vpop.permute.xlu0 %262 }
  0xd4   :  { %v153_v32 = vpop.f32.mrf.mxu0  ;;  %v242_v33 = vpop.f32.mrf.mxu1 }
  0xd5   :  { %v154_v36 = vadd.f32 %v153_v32, %v43_v21  ;;  %v243_v37 = vadd.f32 %v242_v33, %v43_v21  ;;  %v257_v47 = vmax.f32 %v152_v30, 0.0  ;;  %v259_v48 = vmax.f32 %v241_v31, 0.0 }
  0xd7   :  { %v258_v43 = vmax.f32 %v154_v36, 0.0  ;;  %v260_v44 = vmax.f32 %v243_v37, 0.0 }
  0xd9   :  { %318 = vmatprep.subr.mxu0 %v258_v43  ;;  %407 = vmatprep.subr.mxu1 %v260_v44 }
  0xda   :  { %319 = vmatpush1.msra.mxu0 %v257_v47  ;;  %408 = vmatpush1.msra.mxu1 %v259_v48 }
  0xdb   :  { %320 = vmatprep.subr.mxu0 %v254_v51  ;;  %409 = vmatprep.subr.mxu1 %v256_v52 }
  0xdc   :  { %321 = vmatpush1.msra.mxu0 %v253_v55  ;;  %410 = vmatpush1.msra.mxu1 %v255_v56 }
  0xdd   :  { %322 = vmatprep.subr.mxu0 %v250_v57  ;;  %411 = vmatprep.subr.mxu1 %v252_v58 }
  0xde   :  { %323 = vmatpush1.msra.mxu0 %v249_v59  ;;  %412 = vmatpush1.msra.mxu1 %v251_v60  ;;  %v491_v59 = vpop.permute.xlu1 %490 }
  0xdf   :  { %324 = vmatprep.subr.mxu0 %v246_v61  ;;  %413 = vmatprep.subr.mxu1 %v248_v62 }
  0xe0   :  { %325 = vmatpush1.msra.mxu0 %v245_v63  ;;  %414 = vmatpush1.msra.mxu1 %v247_v0 }
  0xe1   :  { %721 = vmatmul.mubr.msk.f32.vlgmr.msra.gmra.mxu0 %vm285_vm2, %v278_v1  ;;  %725 = vmatmul.mubr.msk.f32.vlgmr.msra.gmra.mxu1 %vm285_vm2, %v278_v1 }
  0xe2   :  { %364 = vmatprep.mubr.f32.mxu0 %v765_v2  ;;  %453 = vmatprep.mubr.f32.mxu1 %v765_v2 }
  0xe5   :  { %722 = vmatmul.mubr.msk.f32.gmra.mxu0 %vm285_vm2, %v280_v3  ;;  %726 = vmatmul.mubr.msk.f32.gmra.mxu1 %vm285_vm2, %v280_v3 }
  0xe6   :  { %370 = vmatprep.mubr.f32.mxu0 %v765_v2  ;;  %459 = vmatprep.mubr.f32.mxu1 %v765_v2 }
  0xe9   :  { %723 = vmatmul.mubr.msk.f32.gmra.mxu0 %vm285_vm2, %v282_v4  ;;  %727 = vmatmul.mubr.msk.f32.gmra.mxu1 %vm285_vm2, %v282_v4 }
  0xea   :  { %376 = vmatprep.mubr.f32.mxu0 %v765_v2  ;;  %465 = vmatprep.mubr.f32.mxu1 %v765_v2 }
  0xed   :  { %724 = vmatmul.mubr.msk.f32.gmra.mxu0 %vm285_vm2, %v284_v5  ;;  %728 = vmatmul.mubr.msk.f32.gmra.mxu1 %vm285_vm2, %v284_v5 }
  0xee   :  { %559 = vmatprep.mubr.f32.mxu0 %v765_v2  ;;  %630 = vmatprep.mubr.f32.mxu1 %v765_v2 }
 0x1a1   :  { %v360_v8 = vpop.f32.mrf.mxu0  ;;  %v449_v9 = vpop.f32.mrf.mxu1 }
 0x1a2   :  { %v361_v47 = vadd.f32 %v360_v8, %v263_v34  ;;  %v450_v48 = vadd.f32 %v449_v9, %v263_v34 }
 0x1a3   :  { %v362_v10 = vpop.f32.mrf.mxu0  ;;  %v451_v11 = vpop.f32.mrf.mxu1 }
 0x1a4   :  { %v363_v43 = vadd.f32 %v362_v10, %v263_v34  ;;  %v452_v44 = vadd.f32 %v451_v11, %v263_v34  ;;  %v472_v57 = vmax.f32 %v361_v47, 0.0  ;;  %v474_v58 = vmax.f32 %v450_v48, 0.0 }
 0x1a5   :  { %v366_v12 = vpop.f32.mrf.mxu0  ;;  %v455_v13 = vpop.f32.mrf.mxu1 }
 0x1a6   :  { %v367_v39 = vadd.f32 %v366_v12, %v267_v27  ;;  %v456_v40 = vadd.f32 %v455_v13, %v267_v27  ;;  %v473_v55 = vmax.f32 %v363_v43, 0.0  ;;  %v475_v56 = vmax.f32 %v452_v44, 0.0 }
 0x1a7   :  { %v368_v14 = vpop.f32.mrf.mxu0  ;;  %v457_v15 = vpop.f32.mrf.mxu1 }
 0x1a8   :  { %v369_v35 = vadd.f32 %v368_v14, %v267_v27  ;;  %v458_v36 = vadd.f32 %v457_v15, %v267_v27  ;;  %v476_v53 = vmax.f32 %v367_v39, 0.0  ;;  %v478_v54 = vmax.f32 %v456_v40, 0.0 }
 0x1a9   :  { %v372_v16 = vpop.f32.mrf.mxu0  ;;  %v461_v2 = vpop.f32.mrf.mxu1 }
 0x1aa   :  { %v373_v32 = vadd.f32 %v372_v16, %v271_v17  ;;  %v462_v33 = vadd.f32 %v461_v2, %v271_v17  ;;  %v477_v51 = vmax.f32 %v369_v35, 0.0  ;;  %v479_v52 = vmax.f32 %v458_v36, 0.0 }
 0x1ab   :  { %v374_v18 = vpop.f32.mrf.mxu0  ;;  %v463_v19 = vpop.f32.mrf.mxu1  ;;  %v770_v2 = vmov 1983009808  }
 0x1ac   :  { %v375_v28 = vadd.f32 %v374_v18, %v271_v17  ;;  %v464_v29 = vadd.f32 %v463_v19, %v271_v17  ;;  %v480_v49 = vmax.f32 %v373_v32, 0.0  ;;  %v482_v50 = vmax.f32 %v462_v33, 0.0  ;;  %v702_v32 = vld [vmem:[%s878_s3] sm:$0xff] }
 0x1ad   :  { %v378_v21 = vpop.f32.mrf.mxu0  ;;  %v467_v22 = vpop.f32.mrf.mxu1  ;;  %v672_v17 = vunpack.c.l.s4 %v770_v2  ;;  %v674_v18 = vlaneseq }
 0x1ae   :  { %v379_v23 = vadd.f32 %v378_v21, %v275_v20  ;;  %v468_v24 = vadd.f32 %v467_v22, %v275_v20  ;;  %v481_v45 = vmax.f32 %v375_v28, 0.0  ;;  %v483_v46 = vmax.f32 %v464_v29, 0.0 }
 0x1af   :  { %v380_v25 = vpop.f32.mrf.mxu0  ;;  %v469_v26 = vpop.f32.mrf.mxu1  ;;  %v673_v21 = vunpack.c.0.s8 %v672_v17  ;;  %v675_v22 = vshrl.u32 %v674_v18, 7 }
 0x1b0   :  { %v381_v30 = vadd.f32 %v380_v25, %v275_v20  ;;  %v470_v31 = vadd.f32 %v469_v26, %v275_v20  ;;  %v484_v41 = vmax.f32 %v379_v23, 0.0  ;;  %v486_v42 = vmax.f32 %v468_v24, 0.0 }
 0x1b1   :  { %v676_v25 = vsub.s32 %v673_v21, %v675_v22 }
 0x1b2   :  { %v485_v37 = vmax.f32 %v381_v30, 0.0  ;;  %v487_v38 = vmax.f32 %v470_v31, 0.0 }
 0x1b4   :  { %519 = vmatprep.subr.mxu0 %v485_v37  ;;  %590 = vmatprep.subr.mxu1 %v487_v38 }
 0x1b5   :  { %520 = vmatpush1.msra.mxu0 %v484_v41  ;;  %591 = vmatpush1.msra.mxu1 %v486_v42 }
 0x1b6   :  { %521 = vmatprep.subr.mxu0 %v481_v45  ;;  %592 = vmatprep.subr.mxu1 %v483_v46 }
 0x1b7   :  { %522 = vmatpush1.msra.mxu0 %v480_v49  ;;  %593 = vmatpush1.msra.mxu1 %v482_v50 }
 0x1b8   :  { %523 = vmatprep.subr.mxu0 %v477_v51  ;;  %594 = vmatprep.subr.mxu1 %v479_v52 }
 0x1b9   :  { %524 = vmatpush1.msra.mxu0 %v476_v53  ;;  %595 = vmatpush1.msra.mxu1 %v478_v54 }
 0x1ba   :  { %525 = vmatprep.subr.mxu0 %v473_v55  ;;  %596 = vmatprep.subr.mxu1 %v475_v56 }
 0x1bb   :  { %526 = vmatpush1.msra.mxu0 %v472_v57  ;;  %597 = vmatpush1.msra.mxu1 %v474_v58 }
 0x1bc   :  { %729 = vmatmul.mubr.msk.f32.vlgmr.msra.gmra.mxu0 %vm285_vm2, %v850_v6  ;;  %730 = vmatmul.mubr.msk.f32.vlgmr.msra.gmra.mxu1 %vm285_vm2, %v850_v6 }
 0x27c   :  { %v561_v60 = vpop.f32.mrf.mxu0  ;;  %v632_v61 = vpop.f32.mrf.mxu1 }
 0x27d   :  { %v562_v62 = vadd.f32 %v561_v60, %v491_v59  ;;  %v633_v63 = vadd.f32 %v632_v61, %v491_v59 }
 0x27e   :  { %v563_v0 = vpop.f32.mrf.mxu0  ;;  %v634_v1 = vpop.f32.mrf.mxu1 }
 0x27f   :  { %v731_v3 = vmul.f32 -1.442695, %v562_v62  ;;  %v733_v4 = vmul.f32 -1.442695, %v633_v63  ;;  %v564_v5 = vadd.f32 %v563_v0, %v491_v59  ;;  %v635_v7 = vadd.f32 %v634_v1, %v491_v59 }
 0x281   :  { %749 = vpow2.f32 %v731_v3  ;;  %v732_v8 = vmul.f32 -1.442695, %v564_v5  ;;  %v734_v9 = vmul.f32 -1.442695, %v635_v7 }
 0x282   :  { %751 = vpow2.f32 %v733_v4 }
 0x283   :  { %753 = vpow2.f32 %v732_v8 }
 0x284   :  { %755 = vpow2.f32 %v734_v9 }
 0x28e   :  { %v750_v10 = vpop.eup %749 }
 0x28f   :  { %v752_v11 = vpop.eup %751  ;;  %v649_v6 = vadd.f32 1.0, %v750_v10 }
 0x290   :  { %v754_v12 = vpop.eup %753  ;;  %v651_v13 = vadd.f32 1.0, %v752_v11 }
 0x291   :  { %v756_v14 = vpop.eup %755  ;;  %757 = vrcp.f32 %v649_v6  ;;  %v650_v15 = vadd.f32 1.0, %v754_v12 }
 0x292   :  { %759 = vrcp.f32 %v651_v13  ;;  %v652_v16 = vadd.f32 1.0, %v756_v14 }
 0x293   :  { %761 = vrcp.f32 %v650_v15 }
 0x294   :  { %763 = vrcp.f32 %v652_v16 }
 0x29e   :  { %v758_v23 = vpop.eup %757 }
 0x29f   :  { %v760_v24 = vpop.eup %759 }
 0x2a0   :  { %v762_v26 = vpop.eup %761 }
 0x2a1   :  { %v764_v27 = vpop.eup %763  ;;  %v735_v28 = vpack.c.bf16 %v762_v26, %v758_v23 }
 0x2a2   :  { %v736_v29 = vpack.c.bf16 %v764_v27, %v760_v24 }
 0x2a3   :  { %v677_v30 = vrot.slane %v735_v28, %v676_v25 }
 0x2a4   :  { %v684_v31 = vrot.slane %v736_v29, %v676_v25 }
 0x2a6   :  { %v685_v33 = vcombine.low %v677_v30, %v684_v31 }
 0x2a8   :  { %v703_v34 = vsel %vm701_vm1, %v685_v33, %v702_v32 }
 0x2a9   :  { %704 = vst [vmem:[%s878_s3] sm:$0xff] %v703_v34 }

</bundles_post_ra>
